<compile_context>
chip_gen: v6e
topology: v6e:2x2x1
jax: 0.10.0
libtpu: 0.0.40
codegen_flags: <defaults>
</compile_context>

<pallas_src>
import functools

import jax
import jax.numpy as jnp
from jax.experimental import pallas as pl
from jax.experimental.pallas import tpu as pltpu

_MIB = 1024 * 1024


def _nce_partial_kernel(x_ref, out_ref, *, total_rows, tile_rows):
    """One batch tile: per-row (logsumexp(row) - row[0]), stored lane-dense."""
    x = x_ref[...]                                                     # [TB, C] native dtype
    # Row max in the native dtype (no full-tile f32 materialization before the
    # reduce); the f32 upcast is fused into the exp argument below.
    m = jnp.max(x, axis=-1, keepdims=True)                             # [TB, 1]
    mf = m.astype(jnp.float32)
    e = jnp.exp(x.astype(jnp.float32) - mf)                            # [TB, C] f32
    lse = jnp.log(jnp.sum(e, axis=-1, keepdims=True)) + mf             # [TB, 1]
    per_row = lse - x[:, :1].astype(jnp.float32)                       # [TB, 1]

    if total_rows % tile_rows != 0:
        # Mask padded rows of the last (partial) batch tile.  Must stay a
        # select (jnp.where), so NaN/Inf from padded rows is discarded.
        row = (jax.lax.broadcasted_iota(jnp.int32, per_row.shape, 0)
               + pl.program_id(0) * tile_rows)
        per_row = jnp.where(row < total_rows, per_row, 0.0)

    # Lane-dense store: (1, 1, TB) block, full last dim => unmasked vst.
    out_ref[...] = per_row.reshape(1, 1, tile_rows)


def _sublane_multiple(itemsize):
    """Rows per packed sublane group: 8 for f32, 16 for bf16, 32 for int8/fp8."""
    return max(8, 32 // itemsize)


def _round_up(x, m):
    return ((x + m - 1) // m) * m


def _choose_tile_rows(b, c, itemsize):
    """Bytes-based batch tile, sublane-aligned, >=2 tiles when possible."""
    sub = _sublane_multiple(itemsize)
    if b <= sub:
        return b  # single block equal to the full batch dim (always legal)

    # ~4 MiB input block hits the HBM-roofline plateau; the total budget keeps
    # 2x(double-buffered input) + ~3x(f32 exp/sub temporaries) v7x-safe.
    target_block_bytes = 4 * _MIB
    total_vmem_budget = 36 * _MIB
    per_row_block = c * itemsize
    per_row_total = c * (2 * itemsize + 3 * 4)

    rows = min(target_block_bytes // per_row_block,
               total_vmem_budget // per_row_total)
    rows = max(sub, (rows // sub) * sub)
    rows = min(rows, _round_up(b, sub))

    # Guarantee >=2 grid tiles so a "parallel" batch axis feeds both v7x
    # TensorCores (costs nothing on single-core v5e/v6e).
    if rows >= b:
        half = _round_up((b + 1) // 2, sub)
        if half < b:
            rows = half
    return rows


def _vmem_limit_bytes(tb, c, itemsize):
    """2x input block + ~3x f32 temporaries + headroom, capped cross-gen safe."""
    est = 2 * tb * c * itemsize + 3 * tb * c * 4 + 64 * 1024
    return int(min(48 * _MIB, max(16 * _MIB, est + 8 * _MIB)))


def nce_softmax_loss(x):
    """Pallas implementation of NCESoftmaxLoss.forward.

    Accepts any input whose non-batch singleton axes squeeze away to a [B, C]
    logits matrix (e.g. [B, C], [B, 1, C], [B, C, 1]).  Returns a f32 scalar.
    """
    batch_size = x.shape[0]
    # Squeeze only non-batch singleton axes (robust to B == 1, unlike squeeze()).
    squeezed_shape = (batch_size,) + tuple(d for d in x.shape[1:] if d != 1)
    logits = x.reshape(squeezed_shape)
    assert logits.ndim == 2, (
        "NCESoftmaxLoss expects the non-batch dims of x to squeeze to [batch, classes]"
    )
    B, C = logits.shape
    itemsize = jnp.dtype(logits.dtype).itemsize

    tb = _choose_tile_rows(B, C, itemsize)
    num_tiles = (B + tb - 1) // tb

    kernel = functools.partial(_nce_partial_kernel, total_rows=B, tile_rows=tb)
    per_row = pl.pallas_call(
        kernel,
        out_shape=jax.ShapeDtypeStruct((num_tiles, 1, tb), jnp.float32),
        grid=(num_tiles,),
        in_specs=[pl.BlockSpec((tb, C), lambda i: (i, 0))],
        out_specs=pl.BlockSpec((1, 1, tb), lambda i: (i, 0, 0)),
        compiler_params=pltpu.CompilerParams(
            dimension_semantics=("parallel",),
            vmem_limit_bytes=_vmem_limit_bytes(tb, C, itemsize)),
    )(logits)

    # Finalize: sum of per-row losses (padded rows are zero) / true batch size.
    return jnp.sum(per_row) / jnp.float32(B)


def _reference_loss(x):
    """Pure-JAX reference matching torch.nn.CrossEntropyLoss with zero labels."""
    b = x.shape[0]
    shape = (b,) + tuple(d for d in x.shape[1:] if d != 1)
    logits = x.reshape(shape).astype(jnp.float32)
    lse = jax.scipy.special.logsumexp(logits, axis=-1)
    return jnp.mean(lse - logits[:, 0])


if __name__ == "__main__":
    key = jax.random.PRNGKey(0)
    k1, k2, k3 = jax.random.split(key, 3)

    # Case 1: module-style input with a trailing singleton dim (squeeze path),
    # small f32 shape: batch=8, classes=128 -> single full-batch tile.
    x1 = jax.random.normal(k1, (8, 128, 1), dtype=jnp.float32)
    loss1 = nce_softmax_loss(x1)
    jax.block_until_ready(loss1)
    ref1 = _reference_loss(x1)
    assert jnp.allclose(loss1, ref1, rtol=1e-5, atol=1e-5), (loss1, ref1)

    # Case 2: bf16 logits with batch not a multiple of the (16-aligned) tile
    # size: exercises the multi-tile parallel grid, bf16 sublane alignment,
    # and last-tile masking.  520 x 256 -> 2 tiles of 272 rows.
    x2 = (jax.random.normal(k2, (520, 256), dtype=jnp.float32) * 3.0).astype(
        jnp.bfloat16)
    loss2 = nce_softmax_loss(x2)
    jax.block_until_ready(loss2)
    ref2 = _reference_loss(x2)
    assert jnp.allclose(loss2, ref2, rtol=1e-4, atol=1e-4), (loss2, ref2)

    # Case 3: class count not a multiple of 128 (lane padding of the full-C
    # block must be masked by the axis=-1 max/sum).  48 x 200 f32 -> 2 tiles.
    x3 = jax.random.normal(k3, (48, 200), dtype=jnp.float32) * 2.0
    loss3 = nce_softmax_loss(x3)
    jax.block_until_ready(loss3)
    ref3 = _reference_loss(x3)
    assert jnp.allclose(loss3, ref3, rtol=1e-5, atol=1e-5), (loss3, ref3)

    print("KERNEL_OK")
</pallas_src>

<mosaic_0001>
module attributes {stable_mosaic.version = 11 : i64} {
  func.func @_nce_partial_kernel(%arg0: i32, %arg1: memref<8x128xf32, #tpu.memory_space<vmem>>, %arg2: memref<1x1x8xf32, #tpu.memory_space<vmem>>) attributes {dimension_semantics = [#tpu.dimension_semantics<parallel>], iteration_bounds = array<i64: 1>, scalar_prefetch = 0 : i64, scratch_operands = 0 : i64, tpu.core_type = #tpu.core_type<tc>, window_params = [{transform_indices = @transform_0, window_bounds = array<i64: 8, 128>}, {transform_indices = @transform_1, window_bounds = array<i64: 1, 1, 8>}]} {
    %c0 = arith.constant 0 : index
    %c0_0 = arith.constant 0 : index
    %0 = vector.load %arg1[%c0, %c0_0] : memref<8x128xf32, #tpu.memory_space<vmem>>, vector<8x128xf32>
    %cst = arith.constant dense<0xFF800000> : vector<8xf32>
    %1 = vector.multi_reduction <maximumf>, %0, %cst [1] : vector<8x128xf32> to vector<8xf32>
    %2 = vector.shape_cast %1 : vector<8xf32> to vector<8x1xf32>
    %3 = vector.broadcast %2 : vector<8x1xf32> to vector<8x128xf32>
    %4 = arith.subf %0, %3 : vector<8x128xf32>
    %5 = math.exp %4 : vector<8x128xf32>
    %cst_1 = arith.constant dense<0.000000e+00> : vector<8xf32>
    %6 = vector.multi_reduction <add>, %5, %cst_1 [1] : vector<8x128xf32> to vector<8xf32>
    %7 = vector.shape_cast %6 : vector<8xf32> to vector<8x1xf32>
    %8 = math.log %7 : vector<8x1xf32>
    %9 = arith.addf %8, %2 : vector<8x1xf32>
    %10 = vector.extract_strided_slice %0 {offsets = [0, 0], sizes = [8, 1], strides = [1, 1]} : vector<8x128xf32> to vector<8x1xf32>
    %11 = arith.subf %9, %10 : vector<8x1xf32>
    %12 = vector.shape_cast %11 : vector<8x1xf32> to vector<1x1x8xf32>
    %c0_2 = arith.constant 0 : index
    %c0_3 = arith.constant 0 : index
    %c0_4 = arith.constant 0 : index
    %13 = vector.load %arg2[%c0_2, %c0_3, %c0_4] : memref<1x1x8xf32, #tpu.memory_space<vmem>>, vector<1x1x8xf32>
    tpu.vector_store %arg2[%c0_2, %c0_3, %c0_4], %12 {strides = array<i32>} : memref<1x1x8xf32, #tpu.memory_space<vmem>>, vector<1x1x8xf32>,
    return
  }
  func.func @transform_0(%arg0: i32) -> (i32, i32) {
    %c0_i32 = arith.constant 0 : i32
    %c0_i32_0 = arith.constant 0 : i32
    return %arg0, %c0_i32 : i32, i32
  }
  func.func @transform_1(%arg0: i32) -> (i32, i32, i32) {
    %c0_i32 = arith.constant 0 : i32
    %c0_i32_0 = arith.constant 0 : i32
    %c0_i32_1 = arith.constant 0 : i32
    return %arg0, %c0_i32, %c0_i32_0 : i32, i32, i32
  }
}

</mosaic_0001>

<bundles_post_ra>
// kernel: tpu_custom_call.1
= control target key start
LH: loop header
LB: loop body
LE: loop exit
PB: predicated region body
PF: predicated region fallthrough
CT: control target
= control target key end

     0   :  { %6 = vsyncpa [#allocation3], 0  ;;  %s133_s0 = inlined_call_operand.hbm [shape: f32[8,128], index: 0, kind: input, shape index: {}]   ;;  %s134_s1 = inlined_call_operand.hbm [shape: f32[1,1,8], index: 1, kind: output, shape index: {}]  }
   0x1   :  { %7 = vsyncpa [#allocation4], 0  ;;  %s114_s6 = smov [#allocation2]  }
   0x2   :  { %s14_s7 = sshll.u32 %s114_s6, 4  ;;  %s15_s7 = int_to_ptr.vmem [resolvable:$true] %s14_s7 }
   0x3   :  { %s78_s8 = scalar_lea.vmem %s15_s7, 128  ;;  %p83_p1 = scmp.lt.s32.totalorder %s15_s7, %s15_s7 }
   0x4   :  { %p79_p0 = scmp.ne.s32.totalorder %s15_s7, %s78_s8  ;;  %p84_p2 = scmp.lt.s32.totalorder %s78_s8, %s78_s8 }
   0x6   :  { %p85_p3 = por %p84_p2, %p83_p1 }
   0x8   :  { %p86_p4 = pnand %p85_p3, %p79_p0 }
   0xa   :  { %89 = shalt.err (!%p86_p4)
}
   0xb   :  { %17 = dma.hbm_to_vmem [thread:$0]  %s133_s0, 128, %s15_s7, [#allocation3]  }
   0xc   :  { %110 = dma.done.wait [#allocation3], 128  }
   0xd   :  { %111 = vsyncadd [#allocation3], 4294967168  ;;  %v21_v0 = vld [vmem:[#allocation2] sm:$0xff]  ;;  %v115_v5 = vmov 0   ;;  %v37_v11 = vlaneseq  ;;  %s116_s0 = smov [#allocation5]   ;;  %vm44_vm0 = vcmask 57344  }
   0xe   :  { %22 = vmax.xlane.f32.xlu0 %v21_v0  ;;  %64 = vset.pattern.permute.xlu1 %v115_v5  ;;  %s52_s11 = sshll.u32 %s116_s0, 4  ;;  %s53_s11 = int_to_ptr.vmem [resolvable:$true] %s52_s11 }
   0xf   :  { %65 = vset.pattern.permute.xlu0 %v115_v5  ;;  %v38_v12 = vand.u32 127, %v37_v11  ;;  %v40_v13 = vshrl.u32 %v37_v11, 7  ;;  %s90_s12 = scalar_lea.vmem %s53_s11, 16  ;;  %s94_s13 = scalar_lea.vmem %s53_s11, 32 }
  0x10   :  { %p91_p5 = scmp.ne.s32.totalorder %s53_s11, %s90_s12  ;;  %p95_p6 = scmp.lt.s32.totalorder %s53_s11, %s53_s11 }
  0x11   :  { %v41_v14 = vsub.s32 %v38_v12, %v40_v13  ;;  %p96_p7 = scmp.lt.s32.totalorder %s94_s13, %s90_s12 }
  0x13   :  { %p97_p8 = por %p96_p7, %p95_p6 }
  0x15   :  { %p98_p9 = pnand %p97_p8, %p91_p5 }
  0x97   :  { %v23_v1 = vpop.xlane.xlu0 %22 }
  0x98   :  { %v24_v2 = vsub.f32 %v21_v0, %v23_v1 }
  0x9a   :  { %v25_v3 = vmul.f32 1.442695, %v24_v2 }
  0x9c   :  { %66 = vpow2.f32 %v25_v3 }
  0xa9   :  { %v67_v4 = vpop.eup %66 }
  0xaa   :  { %27 = vadd.xlane.f32.xlu0 %v67_v4 }
 0x133   :  { %v28_v6 = vpop.xlane.xlu0 %27 }
 0x134   :  { %68 = vlog2.f32 %v28_v6 }
 0x141   :  { %v69_v7 = vpop.eup %68 }
 0x142   :  { %v30_v8 = vmul.f32 0.6931472, %v69_v7 }
 0x144   :  { %v31_v9 = vadd.f32 %v30_v8, %v23_v1 }
 0x146   :  { %v32_v10 = vsub.f32 %v31_v9, %v21_v0 }
 0x148   :  { %35 = vperm.xlu1 %64, %v32_v10  }
 0x1c3   :  { %v36_v15 = vpop.permute.xlu1 %35 }
 0x1c4   :  { %v42_v16 = vrot.slane %v36_v15, %v41_v14 }
 0x1c6   :  { %45 = vst.msk [vmem:[#allocation5] sm:$0x1] %vm44_vm0, %v42_v16 }
 0x1c7   :  { %101 = shalt.err (!%p98_p9)
}
 0x1c8   :  { %55 = dma.vmem_to_hbm [thread:$0]  %s53_s11, 16, %s134_s1, [#allocation4]  }
 0x1c9   :  { %112 = dma.done.wait [#allocation4], 16  }
 0x1ca   :  { %113 = vsyncadd [#allocation4], 4294967280 }
 0x1cb   :  { %59 = vsyncpa [#allocation3], 1 }
 0x1cc   :  { %60 = vsyncpa [#allocation4], 1 }

</bundles_post_ra>
